<compile_context>
chip_gen: v6e
topology: v6e:2x2x1
jax: 0.10.0
libtpu: 0.0.40
codegen_flags: <defaults>
</compile_context>

<pallas_src>
import functools

import jax
import jax.numpy as jnp
from jax.experimental import pallas as pl
from jax.experimental.pallas import tpu as pltpu

EPS = 1e-5  # torch.nn.LayerNorm default eps


def _layernorm(x, g, b):
    mu = jnp.mean(x, axis=-1, keepdims=True)
    var = jnp.mean((x - mu) ** 2, axis=-1, keepdims=True)
    return (x - mu) * jax.lax.rsqrt(var + EPS) * g + b


def _kernel(x_ref, g1_ref, be1_ref, w1_ref, b1_ref,
            g2_ref, be2_ref, w2_ref, b2_ref,
            wa1_ref, ba1_ref, wa2_ref, ba2_ref,
            out_ref, *, bb, ln, k_out):
    # x block: (1, BB*ln, fs)  ->  (BB*ln, fs)
    xm = x_ref[0]

    # ---- fc head: LayerNorm -> Dropout(identity) -> Linear -> ReLU -------------
    xn = _layernorm(xm, g1_ref[...], be1_ref[...])
    h = jnp.dot(xn, w1_ref[...], preferred_element_type=jnp.float32) + b1_ref[...]
    h = jnp.maximum(h, 0.0)                                        # (BB*ln, H)

    # ---- fc tail: LayerNorm -> Dropout(identity) -> Linear ---------------------
    hn = _layernorm(h, g2_ref[...], be2_ref[...])
    fco = jnp.dot(hn, w2_ref[...], preferred_element_type=jnp.float32) + b2_ref[...]  # (BB*ln, K)

    # ---- attention MLP over the time axis, stacked across the batch block ------
    # Single minor-dims transpose: (BB, ln, K) -> (BB, K, ln).
    fco_t = jnp.swapaxes(fco.reshape(bb, ln, k_out), 1, 2)         # (BB, K, ln)
    mean_t = jnp.mean(fco_t, axis=-1, keepdims=True)               # (BB, K, 1)  time-mean
    a_in = (fco_t + mean_t).reshape(bb * k_out, ln)                # stacked attn LHS

    ah = jnp.dot(a_in, wa1_ref[...], preferred_element_type=jnp.float32) + ba1_ref[...]
    ah = jnp.maximum(ah, 0.0)                                      # (BB*K, 3H)
    aw = jnp.dot(ah, wa2_ref[...], preferred_element_type=jnp.float32) + ba2_ref[...]  # (BB*K, ln)

    # softmax over time (last axis); division replaced by EUP approx reciprocal
    m = jnp.max(aw, axis=-1, keepdims=True)
    e = jnp.exp(aw - m)
    sm = e * pl.reciprocal(jnp.sum(e, axis=-1, keepdims=True), approx=True)  # (BB*K, ln)

    # logits[b, k] = sum_j fco[b, j, k] * sm[b, k, j]   (== einsum('ijk,ijk->ik'))
    out_ref[0] = jnp.sum(fco_t * sm.reshape(bb, k_out, ln), axis=-1)  # (BB, K)


def _choose_block_b(bs, max_bb=128):
    """Largest divisor of bs <= max_bb; keep >=2 grid blocks when possible (v7x megacore)."""
    bb = min(bs, max_bb)
    while bs % bb:
        bb -= 1
    if bb == bs and bs > 1:
        bb = max(d for d in range(1, bs // 2 + 1) if bs % d == 0)
    return bb


def another_attention_mlp(x, params, *, max_block_b=128):
    bs, ln, fs = x.shape
    K = params["w2"].shape[1]

    bb = _choose_block_b(bs, max_block_b)   # batch elements per grid step
    nb = bs // bb                           # grid size

    # Fold batch blocks: (bs, ln, fs) -> (nb, BB*ln, fs); block = full last-two dims.
    x3 = x.reshape(nb, bb * ln, fs)

    def full_spec(arr):
        nd = arr.ndim
        return pl.BlockSpec(arr.shape, lambda b, _nd=nd: (0,) * _nd)  # VMEM-resident params

    p_order = ["g1", "be1", "w1", "b1", "g2", "be2", "w2", "b2",
               "wa1", "ba1", "wa2", "ba2"]
    p_arrays = [params[k] for k in p_order]

    kernel = functools.partial(_kernel, bb=bb, ln=ln, k_out=K)

    out = pl.pallas_call(
        kernel,
        out_shape=jax.ShapeDtypeStruct((nb, bb, K), jnp.float32),
        grid_spec=pltpu.PrefetchScalarGridSpec(
            num_scalar_prefetch=0,
            grid=(nb,),
            in_specs=[pl.BlockSpec((1, bb * ln, fs), lambda b: (b, 0, 0))]
                     + [full_spec(a) for a in p_arrays],
            out_specs=pl.BlockSpec((1, bb, K), lambda b: (b, 0, 0)),
        ),
        compiler_params=pltpu.CompilerParams(dimension_semantics=("parallel",)),
    )(x3, *p_arrays)
    return out.reshape(bs, K)


def reference(x, p):
    """Pure-JAX mirror of the PyTorch forward (eval mode)."""
    bs, ln, fs = x.shape
    xf = x.reshape(-1, fs)
    xn = _layernorm(xf, p["g1"][0], p["be1"][0])
    h = jnp.maximum(xn @ p["w1"] + p["b1"][0], 0.0)
    hn = _layernorm(h, p["g2"][0], p["be2"][0])
    fco = (hn @ p["w2"] + p["b2"][0]).reshape(bs, ln, -1)
    r = (fco + fco.mean(axis=1, keepdims=True)).swapaxes(1, 2)             # (bs, K, ln)
    ah = jnp.maximum(r @ p["wa1"] + p["ba1"][0], 0.0)
    aw = ah @ p["wa2"] + p["ba2"][0]                                       # (bs, K, ln)
    nw = jax.nn.softmax(aw, axis=2).swapaxes(1, 2)                         # (bs, ln, K)
    return jnp.einsum("ijk,ijk->ik", fco, nw)


def init_params(key, fs, ln, K, H):
    def linear(k, fan_in, fan_out):
        kw, kb = jax.random.split(k)
        bound = 1.0 / (fan_in ** 0.5)
        w = jax.random.uniform(kw, (fan_in, fan_out), jnp.float32, -bound, bound)
        b = jax.random.uniform(kb, (1, fan_out), jnp.float32, -bound, bound)
        return w, b

    ks = jax.random.split(key, 8)
    w1, b1 = linear(ks[0], fs, H)           # Linear(input_size, hidden_size)
    w2, b2 = linear(ks[1], H, K)            # Linear(hidden_size, output_size)
    wa1, ba1 = linear(ks[2], ln, 3 * H)     # attn Linear(time_length, 3*hidden)
    wa2, ba2 = linear(ks[3], 3 * H, ln)     # attn Linear(3*hidden, time_length)
    g1 = 1.0 + 0.1 * jax.random.normal(ks[4], (1, fs), jnp.float32)
    be1 = 0.1 * jax.random.normal(ks[5], (1, fs), jnp.float32)
    g2 = 1.0 + 0.1 * jax.random.normal(ks[6], (1, H), jnp.float32)
    be2 = 0.1 * jax.random.normal(ks[7], (1, H), jnp.float32)
    return dict(g1=g1, be1=be1, w1=w1, b1=b1, g2=g2, be2=be2, w2=w2, b2=b2,
                wa1=wa1, ba1=ba1, wa2=wa2, ba2=ba2)


if __name__ == "__main__":
    # bs=batch, ln=time_length, fs=input_size, H=hidden_size, K=output_size
    bs, ln, fs, H, K = 16, 8, 16, 32, 8
    key = jax.random.PRNGKey(0)
    kx, kp = jax.random.split(key)
    x = jax.random.normal(kx, (bs, ln, fs), jnp.float32)
    params = init_params(kp, fs, ln, K, H)

    logits = jax.block_until_ready(another_attention_mlp(x, params))
    ref = reference(x, params)
    assert logits.shape == (bs, K), logits.shape
    # tolerance loosened slightly vs exact f32 because softmax uses EUP approx reciprocal
    assert jnp.allclose(logits, ref, rtol=2e-3, atol=2e-3), (logits, ref)
    print("KERNEL_OK")
</pallas_src>

<mosaic_0001>
module attributes {stable_mosaic.version = 11 : i64} {
  func.func @_kernel(%arg0: i32, %arg1: memref<1x64x16xf32, #tpu.memory_space<vmem>>, %arg2: memref<1x16xf32, #tpu.memory_space<vmem>>, %arg3: memref<1x16xf32, #tpu.memory_space<vmem>>, %arg4: memref<16x32xf32, #tpu.memory_space<vmem>>, %arg5: memref<1x32xf32, #tpu.memory_space<vmem>>, %arg6: memref<1x32xf32, #tpu.memory_space<vmem>>, %arg7: memref<1x32xf32, #tpu.memory_space<vmem>>, %arg8: memref<32x8xf32, #tpu.memory_space<vmem>>, %arg9: memref<1x8xf32, #tpu.memory_space<vmem>>, %arg10: memref<8x96xf32, #tpu.memory_space<vmem>>, %arg11: memref<1x96xf32, #tpu.memory_space<vmem>>, %arg12: memref<96x8xf32, #tpu.memory_space<vmem>>, %arg13: memref<1x8xf32, #tpu.memory_space<vmem>>, %arg14: memref<1x8x8xf32, #tpu.memory_space<vmem>>) attributes {dimension_semantics = [#tpu.dimension_semantics<parallel>], iteration_bounds = array<i64: 2>, scalar_prefetch = 0 : i64, scratch_operands = 0 : i64, tpu.core_type = #tpu.core_type<tc>, window_params = [{transform_indices = @transform_0, window_bounds = array<i64: 1, 64, 16>}, {pipeline_mode = #tpu.pipeline_mode<synchronous>, transform_indices = @transform_1, window_bounds = array<i64: 1, 16>}, {pipeline_mode = #tpu.pipeline_mode<synchronous>, transform_indices = @transform_2, window_bounds = array<i64: 1, 16>}, {pipeline_mode = #tpu.pipeline_mode<synchronous>, transform_indices = @transform_3, window_bounds = array<i64: 16, 32>}, {pipeline_mode = #tpu.pipeline_mode<synchronous>, transform_indices = @transform_4, window_bounds = array<i64: 1, 32>}, {pipeline_mode = #tpu.pipeline_mode<synchronous>, transform_indices = @transform_5, window_bounds = array<i64: 1, 32>}, {pipeline_mode = #tpu.pipeline_mode<synchronous>, transform_indices = @transform_6, window_bounds = array<i64: 1, 32>}, {pipeline_mode = #tpu.pipeline_mode<synchronous>, transform_indices = @transform_7, window_bounds = array<i64: 32, 8>}, {pipeline_mode = #tpu.pipeline_mode<synchronous>, transform_indices = @transform_8, window_bounds = array<i64: 1, 8>}, {pipeline_mode = #tpu.pipeline_mode<synchronous>, transform_indices = @transform_9, window_bounds = array<i64: 8, 96>}, {pipeline_mode = #tpu.pipeline_mode<synchronous>, transform_indices = @transform_10, window_bounds = array<i64: 1, 96>}, {pipeline_mode = #tpu.pipeline_mode<synchronous>, transform_indices = @transform_11, window_bounds = array<i64: 96, 8>}, {pipeline_mode = #tpu.pipeline_mode<synchronous>, transform_indices = @transform_12, window_bounds = array<i64: 1, 8>}, {transform_indices = @transform_13, window_bounds = array<i64: 1, 8, 8>}]} {
    %c0 = arith.constant 0 : index
    %c0_0 = arith.constant 0 : index
    %c0_1 = arith.constant 0 : index
    %0 = vector.load %arg1[%c0, %c0_0, %c0_1] : memref<1x64x16xf32, #tpu.memory_space<vmem>>, vector<1x64x16xf32>
    %1 = vector.shape_cast %0 : vector<1x64x16xf32> to vector<64x16xf32>
    %c0_2 = arith.constant 0 : index
    %c0_3 = arith.constant 0 : index
    %2 = vector.load %arg2[%c0_2, %c0_3] : memref<1x16xf32, #tpu.memory_space<vmem>>, vector<1x16xf32>
    %c0_4 = arith.constant 0 : index
    %c0_5 = arith.constant 0 : index
    %3 = vector.load %arg3[%c0_4, %c0_5] : memref<1x16xf32, #tpu.memory_space<vmem>>, vector<1x16xf32>
    %cst = arith.constant dense<0.000000e+00> : vector<64xf32>
    %4 = vector.multi_reduction <add>, %1, %cst [1] : vector<64x16xf32> to vector<64xf32>
    %5 = vector.shape_cast %4 : vector<64xf32> to vector<64x1xf32>
    %cst_6 = arith.constant 1.600000e+01 : f32
    %6 = vector.broadcast %cst_6 : f32 to vector<64x1xf32>
    %7 = arith.divf %5, %6 : vector<64x1xf32>
    %8 = vector.broadcast %7 : vector<64x1xf32> to vector<64x16xf32>
    %9 = arith.subf %1, %8 : vector<64x16xf32>
    %10 = arith.mulf %9, %9 : vector<64x16xf32>
    %cst_7 = arith.constant dense<0.000000e+00> : vector<64xf32>
    %11 = vector.multi_reduction <add>, %10, %cst_7 [1] : vector<64x16xf32> to vector<64xf32>
    %12 = vector.shape_cast %11 : vector<64xf32> to vector<64x1xf32>
    %cst_8 = arith.constant 1.600000e+01 : f32
    %13 = vector.broadcast %cst_8 : f32 to vector<64x1xf32>
    %14 = arith.divf %12, %13 : vector<64x1xf32>
    %15 = vector.broadcast %7 : vector<64x1xf32> to vector<64x16xf32>
    %16 = arith.subf %1, %15 : vector<64x16xf32>
    %cst_9 = arith.constant 9.99999974E-6 : f32
    %17 = vector.broadcast %cst_9 : f32 to vector<64x1xf32>
    %18 = arith.addf %14, %17 : vector<64x1xf32>
    %19 = math.rsqrt %18 : vector<64x1xf32>
    %20 = vector.broadcast %19 : vector<64x1xf32> to vector<64x16xf32>
    %21 = arith.mulf %16, %20 : vector<64x16xf32>
    %22 = vector.broadcast %2 : vector<1x16xf32> to vector<64x16xf32>
    %23 = arith.mulf %21, %22 : vector<64x16xf32>
    %24 = vector.broadcast %3 : vector<1x16xf32> to vector<64x16xf32>
    %25 = arith.addf %23, %24 : vector<64x16xf32>
    %c0_10 = arith.constant 0 : index
    %c0_11 = arith.constant 0 : index
    %26 = vector.load %arg4[%c0_10, %c0_11] : memref<16x32xf32, #tpu.memory_space<vmem>>, vector<16x32xf32>
    %cst_12 = arith.constant dense<0.000000e+00> : vector<64x32xf32>
    %27 = tpu.matmul %25, %26, %cst_12 {dimension_numbers = #tpu.dot_dimension_numbers<[1], [0], [0], [1], [0, 0, 1, 1], [], []>} : vector<64x16xf32>, vector<16x32xf32>, vector<64x32xf32> -> vector<64x32xf32>
    %c0_13 = arith.constant 0 : index
    %c0_14 = arith.constant 0 : index
    %28 = vector.load %arg5[%c0_13, %c0_14] : memref<1x32xf32, #tpu.memory_space<vmem>>, vector<1x32xf32>
    %29 = vector.broadcast %28 : vector<1x32xf32> to vector<64x32xf32>
    %30 = arith.addf %27, %29 : vector<64x32xf32>
    %cst_15 = arith.constant 0.000000e+00 : f32
    %31 = vector.broadcast %cst_15 : f32 to vector<64x32xf32>
    %32 = arith.maximumf %30, %31 : vector<64x32xf32>
    %c0_16 = arith.constant 0 : index
    %c0_17 = arith.constant 0 : index
    %33 = vector.load %arg6[%c0_16, %c0_17] : memref<1x32xf32, #tpu.memory_space<vmem>>, vector<1x32xf32>
    %c0_18 = arith.constant 0 : index
    %c0_19 = arith.constant 0 : index
    %34 = vector.load %arg7[%c0_18, %c0_19] : memref<1x32xf32, #tpu.memory_space<vmem>>, vector<1x32xf32>
    %cst_20 = arith.constant dense<0.000000e+00> : vector<64xf32>
    %35 = vector.multi_reduction <add>, %32, %cst_20 [1] : vector<64x32xf32> to vector<64xf32>
    %36 = vector.shape_cast %35 : vector<64xf32> to vector<64x1xf32>
    %cst_21 = arith.constant 3.200000e+01 : f32
    %37 = vector.broadcast %cst_21 : f32 to vector<64x1xf32>
    %38 = arith.divf %36, %37 : vector<64x1xf32>
    %39 = vector.broadcast %38 : vector<64x1xf32> to vector<64x32xf32>
    %40 = arith.subf %32, %39 : vector<64x32xf32>
    %41 = arith.mulf %40, %40 : vector<64x32xf32>
    %cst_22 = arith.constant dense<0.000000e+00> : vector<64xf32>
    %42 = vector.multi_reduction <add>, %41, %cst_22 [1] : vector<64x32xf32> to vector<64xf32>
    %43 = vector.shape_cast %42 : vector<64xf32> to vector<64x1xf32>
    %cst_23 = arith.constant 3.200000e+01 : f32
    %44 = vector.broadcast %cst_23 : f32 to vector<64x1xf32>
    %45 = arith.divf %43, %44 : vector<64x1xf32>
    %46 = vector.broadcast %38 : vector<64x1xf32> to vector<64x32xf32>
    %47 = arith.subf %32, %46 : vector<64x32xf32>
    %cst_24 = arith.constant 9.99999974E-6 : f32
    %48 = vector.broadcast %cst_24 : f32 to vector<64x1xf32>
    %49 = arith.addf %45, %48 : vector<64x1xf32>
    %50 = math.rsqrt %49 : vector<64x1xf32>
    %51 = vector.broadcast %50 : vector<64x1xf32> to vector<64x32xf32>
    %52 = arith.mulf %47, %51 : vector<64x32xf32>
    %53 = vector.broadcast %33 : vector<1x32xf32> to vector<64x32xf32>
    %54 = arith.mulf %52, %53 : vector<64x32xf32>
    %55 = vector.broadcast %34 : vector<1x32xf32> to vector<64x32xf32>
    %56 = arith.addf %54, %55 : vector<64x32xf32>
    %c0_25 = arith.constant 0 : index
    %c0_26 = arith.constant 0 : index
    %57 = vector.load %arg8[%c0_25, %c0_26] : memref<32x8xf32, #tpu.memory_space<vmem>>, vector<32x8xf32>
    %cst_27 = arith.constant dense<0.000000e+00> : vector<64x8xf32>
    %58 = tpu.matmul %56, %57, %cst_27 {dimension_numbers = #tpu.dot_dimension_numbers<[1], [0], [0], [1], [0, 0, 1, 1], [], []>} : vector<64x32xf32>, vector<32x8xf32>, vector<64x8xf32> -> vector<64x8xf32>
    %c0_28 = arith.constant 0 : index
    %c0_29 = arith.constant 0 : index
    %59 = vector.load %arg9[%c0_28, %c0_29] : memref<1x8xf32, #tpu.memory_space<vmem>>, vector<1x8xf32>
    %60 = vector.broadcast %59 : vector<1x8xf32> to vector<64x8xf32>
    %61 = arith.addf %58, %60 : vector<64x8xf32>
    %62 = vector.shape_cast %61 : vector<64x8xf32> to vector<8x8x8xf32>
    %63 = tpu.transpose %62, [0, 2, 1] : vector<8x8x8xf32> -> vector<8x8x8xf32>
    %cst_30 = arith.constant dense<0.000000e+00> : vector<8x8xf32>
    %64 = vector.multi_reduction <add>, %63, %cst_30 [2] : vector<8x8x8xf32> to vector<8x8xf32>
    %65 = vector.shape_cast %64 : vector<8x8xf32> to vector<8x8x1xf32>
    %cst_31 = arith.constant 8.000000e+00 : f32
    %66 = vector.broadcast %cst_31 : f32 to vector<8x8x1xf32>
    %67 = arith.divf %65, %66 : vector<8x8x1xf32>
    %68 = vector.broadcast %67 : vector<8x8x1xf32> to vector<8x8x8xf32>
    %69 = arith.addf %63, %68 : vector<8x8x8xf32>
    %70 = vector.shape_cast %69 : vector<8x8x8xf32> to vector<64x8xf32>
    %c0_32 = arith.constant 0 : index
    %c0_33 = arith.constant 0 : index
    %71 = vector.load %arg10[%c0_32, %c0_33] : memref<8x96xf32, #tpu.memory_space<vmem>>, vector<8x96xf32>
    %cst_34 = arith.constant dense<0.000000e+00> : vector<64x96xf32>
    %72 = tpu.matmul %70, %71, %cst_34 {dimension_numbers = #tpu.dot_dimension_numbers<[1], [0], [0], [1], [0, 0, 1, 1], [], []>} : vector<64x8xf32>, vector<8x96xf32>, vector<64x96xf32> -> vector<64x96xf32>
    %c0_35 = arith.constant 0 : index
    %c0_36 = arith.constant 0 : index
    %73 = vector.load %arg11[%c0_35, %c0_36] : memref<1x96xf32, #tpu.memory_space<vmem>>, vector<1x96xf32>
    %74 = vector.broadcast %73 : vector<1x96xf32> to vector<64x96xf32>
    %75 = arith.addf %72, %74 : vector<64x96xf32>
    %cst_37 = arith.constant 0.000000e+00 : f32
    %76 = vector.broadcast %cst_37 : f32 to vector<64x96xf32>
    %77 = arith.maximumf %75, %76 : vector<64x96xf32>
    %c0_38 = arith.constant 0 : index
    %c0_39 = arith.constant 0 : index
    %78 = vector.load %arg12[%c0_38, %c0_39] : memref<96x8xf32, #tpu.memory_space<vmem>>, vector<96x8xf32>
    %cst_40 = arith.constant dense<0.000000e+00> : vector<64x8xf32>
    %79 = tpu.matmul %77, %78, %cst_40 {dimension_numbers = #tpu.dot_dimension_numbers<[1], [0], [0], [1], [0, 0, 1, 1], [], []>} : vector<64x96xf32>, vector<96x8xf32>, vector<64x8xf32> -> vector<64x8xf32>
    %c0_41 = arith.constant 0 : index
    %c0_42 = arith.constant 0 : index
    %80 = vector.load %arg13[%c0_41, %c0_42] : memref<1x8xf32, #tpu.memory_space<vmem>>, vector<1x8xf32>
    %81 = vector.broadcast %80 : vector<1x8xf32> to vector<64x8xf32>
    %82 = arith.addf %79, %81 : vector<64x8xf32>
    %cst_43 = arith.constant dense<0xFF800000> : vector<64xf32>
    %83 = vector.multi_reduction <maximumf>, %82, %cst_43 [1] : vector<64x8xf32> to vector<64xf32>
    %84 = vector.shape_cast %83 : vector<64xf32> to vector<64x1xf32>
    %85 = vector.broadcast %84 : vector<64x1xf32> to vector<64x8xf32>
    %86 = arith.subf %82, %85 : vector<64x8xf32>
    %87 = math.exp %86 : vector<64x8xf32>
    %cst_44 = arith.constant dense<0.000000e+00> : vector<64xf32>
    %88 = vector.multi_reduction <add>, %87, %cst_44 [1] : vector<64x8xf32> to vector<64xf32>
    %89 = vector.shape_cast %88 : vector<64xf32> to vector<64x1xf32>
    %90 = tpu.reciprocal %89 {approx = true} : vector<64x1xf32> -> vector<64x1xf32>
    %91 = vector.broadcast %90 : vector<64x1xf32> to vector<64x8xf32>
    %92 = arith.mulf %87, %91 : vector<64x8xf32>
    %93 = vector.shape_cast %92 : vector<64x8xf32> to vector<8x8x8xf32>
    %94 = arith.mulf %63, %93 : vector<8x8x8xf32>
    %cst_45 = arith.constant dense<0.000000e+00> : vector<8x8xf32>
    %95 = vector.multi_reduction <add>, %94, %cst_45 [2] : vector<8x8x8xf32> to vector<8x8xf32>
    %c0_46 = arith.constant 0 : index
    %c0_47 = arith.constant 0 : index
    %c0_48 = arith.constant 0 : index
    %96 = vector.load %arg14[%c0_46, %c0_47, %c0_48] : memref<1x8x8xf32, #tpu.memory_space<vmem>>, vector<1x8x8xf32>
    %97 = vector.shape_cast %96 : vector<1x8x8xf32> to vector<8x8xf32>
    %98 = vector.shape_cast %95 : vector<8x8xf32> to vector<1x8x8xf32>
    tpu.vector_store %arg14[%c0_46, %c0_47, %c0_48], %98 {strides = array<i32>} : memref<1x8x8xf32, #tpu.memory_space<vmem>>, vector<1x8x8xf32>,
    return
  }
  func.func @transform_0(%arg0: i32) -> (i32, i32, i32) {
    %c0_i32 = arith.constant 0 : i32
    %c0_i32_0 = arith.constant 0 : i32
    %c0_i32_1 = arith.constant 0 : i32
    return %arg0, %c0_i32, %c0_i32_0 : i32, i32, i32
  }
  func.func @transform_1(%arg0: i32) -> (i32, i32) {
    %c0_i32 = arith.constant 0 : i32
    %c0_i32_0 = arith.constant 0 : i32
    %c0_i32_1 = arith.constant 0 : i32
    return %c0_i32, %c0_i32_0 : i32, i32
  }
  func.func @transform_2(%arg0: i32) -> (i32, i32) {
    %c0_i32 = arith.constant 0 : i32
    %c0_i32_0 = arith.constant 0 : i32
    %c0_i32_1 = arith.constant 0 : i32
    return %c0_i32, %c0_i32_0 : i32, i32
  }
  func.func @transform_3(%arg0: i32) -> (i32, i32) {
    %c0_i32 = arith.constant 0 : i32
    %c0_i32_0 = arith.constant 0 : i32
    %c0_i32_1 = arith.constant 0 : i32
    return %c0_i32, %c0_i32_0 : i32, i32
  }
  func.func @transform_4(%arg0: i32) -> (i32, i32) {
    %c0_i32 = arith.constant 0 : i32
    %c0_i32_0 = arith.constant 0 : i32
    %c0_i32_1 = arith.constant 0 : i32
    return %c0_i32, %c0_i32_0 : i32, i32
  }
  func.func @transform_5(%arg0: i32) -> (i32, i32) {
    %c0_i32 = arith.constant 0 : i32
    %c0_i32_0 = arith.constant 0 : i32
    %c0_i32_1 = arith.constant 0 : i32
    return %c0_i32, %c0_i32_0 : i32, i32
  }
  func.func @transform_6(%arg0: i32) -> (i32, i32) {
    %c0_i32 = arith.constant 0 : i32
    %c0_i32_0 = arith.constant 0 : i32
    %c0_i32_1 = arith.constant 0 : i32
    return %c0_i32, %c0_i32_0 : i32, i32
  }
  func.func @transform_7(%arg0: i32) -> (i32, i32) {
    %c0_i32 = arith.constant 0 : i32
    %c0_i32_0 = arith.constant 0 : i32
    %c0_i32_1 = arith.constant 0 : i32
    return %c0_i32, %c0_i32_0 : i32, i32
  }
  func.func @transform_8(%arg0: i32) -> (i32, i32) {
    %c0_i32 = arith.constant 0 : i32
    %c0_i32_0 = arith.constant 0 : i32
    %c0_i32_1 = arith.constant 0 : i32
    return %c0_i32, %c0_i32_0 : i32, i32
  }
  func.func @transform_9(%arg0: i32) -> (i32, i32) {
    %c0_i32 = arith.constant 0 : i32
    %c0_i32_0 = arith.constant 0 : i32
    %c0_i32_1 = arith.constant 0 : i32
    return %c0_i32, %c0_i32_0 : i32, i32
  }
  func.func @transform_10(%arg0: i32) -> (i32, i32) {
    %c0_i32 = arith.constant 0 : i32
    %c0_i32_0 = arith.constant 0 : i32
    %c0_i32_1 = arith.constant 0 : i32
    return %c0_i32, %c0_i32_0 : i32, i32
  }
  func.func @transform_11(%arg0: i32) -> (i32, i32) {
    %c0_i32 = arith.constant 0 : i32
    %c0_i32_0 = arith.constant 0 : i32
    %c0_i32_1 = arith.constant 0 : i32
    return %c0_i32, %c0_i32_0 : i32, i32
  }
  func.func @transform_12(%arg0: i32) -> (i32, i32) {
    %c0_i32 = arith.constant 0 : i32
    %c0_i32_0 = arith.constant 0 : i32
    %c0_i32_1 = arith.constant 0 : i32
    return %c0_i32, %c0_i32_0 : i32, i32
  }
  func.func @transform_13(%arg0: i32) -> (i32, i32, i32) {
    %c0_i32 = arith.constant 0 : i32
    %c0_i32_0 = arith.constant 0 : i32
    %c0_i32_1 = arith.constant 0 : i32
    return %arg0, %c0_i32, %c0_i32_0 : i32, i32, i32
  }
}

</mosaic_0001>

<bundles_post_ra>
// kernel: tpu_custom_call.1
= control target key start
LH: loop header
LB: loop body
LE: loop exit
PB: predicated region body
PF: predicated region fallthrough
CT: control target
= control target key end

     0   :  { %s2669_s0 = inlined_call_operand.vmem [shape: f32[2,64,16], index: 0, kind: input, shape index: {}]   ;;  %s2670_s1 = inlined_call_operand.vmem [shape: f32[1,16], index: 1, kind: input, shape index: {}]   ;;  %s2671_s2 = inlined_call_operand.vmem [shape: f32[1,16], index: 2, kind: input, shape index: {}]   ;;  %s2672_s3 = inlined_call_operand.vmem [shape: f32[16,32], index: 3, kind: input, shape index: {}]   ;;  %s2673_s4 = inlined_call_operand.vmem [shape: f32[1,32], index: 4, kind: input, shape index: {}]   ;;  %s2674_s5 = inlined_call_operand.vmem [shape: f32[1,32], index: 5, kind: input, shape index: {}]   ;;  %s2675_s6 = inlined_call_operand.vmem [shape: f32[1,32], index: 6, kind: input, shape index: {}]   ;;  %s2676_s7 = inlined_call_operand.vmem [shape: f32[32,8], index: 7, kind: input, shape index: {}]   ;;  %s2677_s8 = inlined_call_operand.vmem [shape: f32[1,8], index: 8, kind: input, shape index: {}]   ;;  %s2678_s9 = inlined_call_operand.vmem [shape: f32[8,96], index: 9, kind: input, shape index: {}]   ;;  %s2679_s10 = inlined_call_operand.vmem [shape: f32[1,96], index: 10, kind: input, shape index: {}]   ;;  %s2680_s11 = inlined_call_operand.vmem [shape: f32[96,8], index: 11, kind: input, shape index: {}]   ;;  %s2681_s12 = inlined_call_operand.vmem [shape: f32[1,8], index: 12, kind: input, shape index: {}]   ;;  %s2682_s13 = inlined_call_operand.hbm [shape: f32[2,8,8], index: 13, kind: output, shape index: {}]  }
   0x1   :  { %2683 = sst [smem:[#allocation5_spill]] %s2669_s0 }
   0x2   :  { %2684 = sst [smem:[#allocation6_spill]] %s2670_s1 }
   0x3   :  { %2685 = sst [smem:[#allocation7_spill]] %s2671_s2 }
   0x4   :  { %18 = vsyncpa [#allocation3], 0 }
   0x5   :  { %20 = vsyncpa [#allocation3 + $0x1], 0  ;;  %s2274_s25 = smov 0   ;;  %s2276_s26 = smov 0  }
   0x6   :  { %s2278_s27 = smov 0   ;;  %s2280_s28 = smov 0  }
   0x7 LB: > { %s2295_s29 = sadd.s32 4294967295, %s2201_s28   ;;  %s1848_s30 = sadd.s32 4294967294, %s2201_s28   ;;  %s2201_s28 = sphi %s2280_s28, %s2694_s28   ;;  %s2197_s27 = sphi %s2278_s27, %s2693_s27   ;;  %s2193_s26 = sphi %s2276_s26, %s2692_s26   ;;  %s2189_s25 = sphi %s2274_s25, %s2691_s25  }
   0x8   : > { %s2299_s14 = sadd.s32 1, %s2201_s28   ;;  %s311_s15 = sadd.s32 1, %s2197_s27 }
   0x9   : > { %s308_s16 = ssub.s32 %s2201_s28, %s2299_s14  ;;  %p321_p0 = scmp.ne.s32.totalorder %s2197_s27, %s2193_s26 }
   0xa   : > { %p309_p1 = scmp.eq.s32.totalorder %s308_s16, 0  ;;  %p322_p2 = scmp.eq.s32.totalorder %s2295_s29, 1 }
   0xb   : > { %p327_p3 = scmp.ne.s32.totalorder %s2193_s26, %s2189_s25  ;;  %p328_p4 = scmp.eq.s32.totalorder %s1848_s30, 1 }
   0xc   : > { %s2310_s17 = scalar_select %p309_p1, %s2197_s27, %s311_s15  }
   0xd   : > { %p2312_p5 = por %p322_p2, %p321_p0  ;;  %p2316_p6 = por %p328_p4, %p327_p3 }
   0xe   : > { %p1851_p7 = scmp.ge.s32.totalorder %s2201_s28, 1  ;;  %p390_p8 = scmp.lt.s32.totalorder %s2201_s28, 3 }
  0x10   : > { %p391_p9 = pnand %p1851_p7, %p390_p8 }
  0x11   : > { %p434_p10 = scmp.lt.s32.totalorder (!%p391_p9), %s2295_s29, 1  ;;  %s2688_s0 = sld [smem:[#allocation5_spill]] (!%p391_p9) }
  0x12   : > { %394 = sbr.rel (%p391_p9) target bundleno = 2200 (0x898), region = 72  ;;  %s2689_s1 = sld [smem:[#allocation6_spill]] (!%p391_p9) }
  0x13   : > { %s2690_s2 = sld [smem:[#allocation7_spill]] (!%p391_p9)  ;;  %s431_s23 = sand.u32 (!%p391_p9), 1, %s2193_s26  }
  0x14   : > { %s1896_s30 = sshll.u32 (!%p391_p9), %s2295_s29, 7 }
  0x15   : > { %s2631_s22 = scalar_lea.hbm (!%p391_p9), %s2682_s13, %s1896_s30 }
  0x17   : > { %s435_s20 = scalar_select %p434_p10, %s2295_s29, 1  ;;  %vm449_vm0 = vcmask 130048   ;;  %v584_v56 = vld [vmem:[%s2672_s3 + $0x8] sm:$0xff]  ;;  %v583_v57 = vld [vmem:[%s2672_s3] sm:$0xff]  ;;  %vm731_vm1 = vcmask 261120   ;;  %vm1261_vm2 = vcmask 64512  }
  0x18   : > { %1951 = vmatprep.subr.mxu0 %v584_v56  ;;  %vm1467_vm3 = vcmask 785408   ;;  %vm1759_vm4 = vcmask 1041409   ;;  %vm1761_vm5 = vcmask 1042434   ;;  %vm1763_vm6 = vcmask 1043459   ;;  %s2203_s29 = smov [#allocation2]  }
  0x19   : > { %s1899_s21 = sshll.u32 %s435_s20, 6  ;;  %1952 = vmatpush3.msra.mxu0 %v584_v56  ;;  %vm1765_vm7 = vcmask 1044484   ;;  %vm1767_vm8 = vcmask 1045509   ;;  %vm1769_vm9 = vcmask 1046534   ;;  %vm1771_vm10 = vcmask 1047559  }
  0x1a   : > { %s438_s24 = scalar_lea.vmem %s2688_s0, %s1899_s21  ;;  %1953 = vmatprep.subr.mxu0 %v583_v57  ;;  %s1776_s0 = scalar_lea.sflag [#allocation3], %s431_s23 }
  0x1b   : > { %v439_v0 = vld [vmem:[%s438_s24] sm:$0xff]  ;;  %v441_v1 = vld [vmem:[%s438_s24 + $0x10] sm:$0xff]  ;;  %v440_v2 = vld [vmem:[%s438_s24 + $0x8] sm:$0xff]  ;;  %1954 = vmatpush3.msra.mxu0 %v583_v57 }
  0x1c   : > { %v450_v3 = vsel %vm449_vm0, %v439_v0, 0.0  ;;  %v456_v4 = vsel %vm449_vm0, %v441_v1, 0.0  ;;  %v442_v5 = vld [vmem:[%s438_s24 + $0x18] sm:$0xff]  ;;  %v453_v6 = vsel %vm449_vm0, %v440_v2, 0.0  ;;  %v443_v8 = vld [vmem:[%s438_s24 + $0x20] sm:$0xff]  ;;  %v444_v9 = vld [vmem:[%s438_s24 + $0x28] sm:$0xff] }
  0x1d   : > { %451 = vadd.xlane.f32.xlu0 %v450_v3  ;;  %457 = vadd.xlane.f32.xlu1 %v456_v4  ;;  %v459_v7 = vsel %vm449_vm0, %v442_v5, 0.0  ;;  %v462_v10 = vsel %vm449_vm0, %v443_v8, 0.0  ;;  %v465_v11 = vsel %vm449_vm0, %v444_v9, 0.0  ;;  %v445_v12 = vld [vmem:[%s438_s24 + $0x30] sm:$0xff]  ;;  %v446_v13 = vld [vmem:[%s438_s24 + $0x38] sm:$0xff]  ;;  %s1852_s24 = sshll.u32 %s431_s23, 3 }
  0x1e   : > { %v468_v14 = vsel %vm449_vm0, %v445_v12, 0.0  ;;  %v471_v15 = vsel %vm449_vm0, %v446_v13, 0.0  ;;  %s433_s15 = scalar_lea.vmem [#allocation2], %s1852_s24  ;;  %s2145_s24 = sshll.u32 %s2203_s29, 4  ;;  %s2146_s24 = int_to_ptr.vmem [resolvable:$false] %s2145_s24 }
  0x1f   : > { %s1789_s16 = sshll.u32 %s433_s15, 4  ;;  %s1790_s16 = int_to_ptr.vmem [resolvable:$true] %s1789_s16 }
  0x20   : > { %p2148_p0 = scmp.lt.s32.totalorder %s1790_s16, %s2146_s24 }
  0x21   : > { %454 = vadd.xlane.f32.xlu0 %v453_v6  ;;  %460 = vadd.xlane.f32.xlu1 %v459_v7 }
  0x25   : > { %463 = vadd.xlane.f32.xlu0 %v462_v10  ;;  %466 = vadd.xlane.f32.xlu1 %v465_v11 }
  0x29   : > { %469 = vadd.xlane.f32.xlu0 %v468_v14  ;;  %472 = vadd.xlane.f32.xlu1 %v471_v15 }
  0xa6   : > { %v452_v16 = vpop.xlane.xlu0 %451  ;;  %v458_v17 = vpop.xlane.xlu1 %457 }
  0xa7   : > { %v475_v18 = vmul.f32 0.0625, %v452_v16  ;;  %v477_v19 = vmul.f32 0.0625, %v458_v17 }
  0xa9   : > { %v2335_v20 = vsub.f32 %v439_v0, %v475_v18  ;;  %v2337_v21 = vsub.f32 %v441_v1, %v477_v19  ;;  %v1855_v18 = vld [vmem:[%s2689_s1] ss:$0 sm:$0xff]  ;;  %s2141_s1 = scalar_lea.vmem %s1790_s16, 128 }
  0xaa   : > { %v455_v22 = vpop.xlane.xlu0 %454  ;;  %v461_v23 = vpop.xlane.xlu1 %460  ;;  %p2142_p11 = scmp.ne.s32.totalorder %s1790_s16, %s2141_s1 }
  0xab   : > { %v476_v24 = vmul.f32 0.0625, %v455_v22  ;;  %v478_v25 = vmul.f32 0.0625, %v461_v23  ;;  %v491_v26 = vmul.f32 %v2335_v20, %v2335_v20  ;;  %v493_v27 = vmul.f32 %v2337_v21, %v2337_v21  ;;  %v1856_v23 = vld [vmem:[%s2690_s2] ss:$0 sm:$0xff]  ;;  %s2147_s2 = scalar_lea.vmem %s2146_s24, 256 }
  0xac   : > { %p2143_p12 = pnand %p2142_p11, %p2312_p5  ;;  %p2149_p1 = scmp.lt.s32.totalorder %s2147_s2, %s2141_s1 }
  0xad   : > { %v2343_v28 = vsub.f32 %v440_v2, %v476_v24  ;;  %v2345_v29 = vsub.f32 %v442_v5, %v478_v25  ;;  %v499_v30 = vsel %vm449_vm0, %v491_v26, 0.0  ;;  %v505_v33 = vsel %vm449_vm0, %v493_v27, 0.0 }
  0xae   : > { %500 = vadd.xlane.f32.xlu0 %v499_v30  ;;  %v464_v31 = vpop.xlane.xlu0 %463  ;;  %v467_v32 = vpop.xlane.xlu1 %466  ;;  %p2144_p13 = pneg %p2143_p12  ;;  %p2150_p2 = por %p2149_p1, %p2148_p0 }
  0xaf   : > { %v479_v34 = vmul.f32 0.0625, %v464_v31  ;;  %v480_v35 = vmul.f32 0.0625, %v467_v32  ;;  %v492_v36 = vmul.f32 %v2343_v28, %v2343_v28  ;;  %v494_v37 = vmul.f32 %v2345_v29, %v2345_v29 }
  0xb0   : > { %p2151_p3 = pnand %p2150_p2, %p2144_p13 }
  0xb1   : > { %v2353_v38 = vsub.f32 %v443_v8, %v479_v34  ;;  %v2355_v39 = vsub.f32 %v444_v9, %v480_v35  ;;  %v502_v40 = vsel %vm449_vm0, %v492_v36, 0.0  ;;  %v508_v43 = vsel %vm449_vm0, %v494_v37, 0.0 }
  0xb2   : > { %506 = vadd.xlane.f32.xlu0 %v505_v33  ;;  %503 = vadd.xlane.f32.xlu1 %v502_v40  ;;  %v470_v41 = vpop.xlane.xlu0 %469  ;;  %v473_v42 = vpop.xlane.xlu1 %472 }
  0xb3   : > { %v481_v44 = vmul.f32 0.0625, %v470_v41  ;;  %v482_v45 = vmul.f32 0.0625, %v473_v42  ;;  %v495_v46 = vmul.f32 %v2353_v38, %v2353_v38  ;;  %v496_v47 = vmul.f32 %v2355_v39, %v2355_v39 }
  0xb5   : > { %v2363_v48 = vsub.f32 %v445_v12, %v481_v44  ;;  %v2365_v49 = vsub.f32 %v446_v13, %v482_v45  ;;  %v511_v50 = vsel %vm449_vm0, %v495_v46, 0.0  ;;  %v514_v51 = vsel %vm449_vm0, %v496_v47, 0.0 }
  0xb6   : > { %509 = vadd.xlane.f32.xlu1 %v508_v43  ;;  %512 = vadd.xlane.f32.xlu0 %v511_v50 }
  0xb7   : > { %v497_v52 = vmul.f32 %v2363_v48, %v2363_v48  ;;  %v498_v53 = vmul.f32 %v2365_v49, %v2365_v49 }
  0xb9   : > { %v517_v54 = vsel %vm449_vm0, %v497_v52, 0.0  ;;  %v520_v55 = vsel %vm449_vm0, %v498_v53, 0.0 }
  0xba   : > { %515 = vadd.xlane.f32.xlu1 %v514_v51  ;;  %518 = vadd.xlane.f32.xlu0 %v517_v54 }
  0xbe   : > { %521 = vadd.xlane.f32.xlu1 %v520_v55 }
 0x137   : > { %v501_v58 = vpop.xlane.xlu0 %500 }
 0x138   : > { %v523_v59 = vmul.f32 0.0625, %v501_v58 }
 0x13a   : > { %v531_v60 = vadd.f32 1e-05, %v523_v59 }
 0x13b   : > { %v504_v61 = vpop.xlane.xlu1 %503  ;;  %v507_v62 = vpop.xlane.xlu0 %506 }
 0x13c   : > { %2077 = vrsqrt.f32 %v531_v60  ;;  %v524_v63 = vmul.f32 0.0625, %v504_v61  ;;  %v525_v0 = vmul.f32 0.0625, %v507_v62 }
 0x13e   : > { %v532_v1 = vadd.f32 1e-05, %v524_v63  ;;  %v533_v2 = vadd.f32 1e-05, %v525_v0 }
 0x13f   : > { %v510_v3 = vpop.xlane.xlu1 %509  ;;  %v513_v4 = vpop.xlane.xlu0 %512 }
 0x140   : > { %2079 = vrsqrt.f32 %v532_v1  ;;  %v526_v5 = vmul.f32 0.0625, %v510_v3  ;;  %v527_v6 = vmul.f32 0.0625, %v513_v4 }
 0x141   : > { %2081 = vrsqrt.f32 %v533_v2 }
 0x142   : > { %v534_v7 = vadd.f32 1e-05, %v526_v5  ;;  %v535_v8 = vadd.f32 1e-05, %v527_v6 }
 0x143   : > { %v516_v9 = vpop.xlane.xlu1 %515  ;;  %v519_v10 = vpop.xlane.xlu0 %518 }
 0x144   : > { %2083 = vrsqrt.f32 %v534_v7  ;;  %v528_v11 = vmul.f32 0.0625, %v516_v9  ;;  %v529_v12 = vmul.f32 0.0625, %v519_v10 }
 0x145   : > { %2085 = vrsqrt.f32 %v535_v8 }
 0x146   : > { %v536_v13 = vadd.f32 1e-05, %v528_v11  ;;  %v537_v14 = vadd.f32 1e-05, %v529_v12 }
 0x147   : > { %v522_v15 = vpop.xlane.xlu1 %521 }
 0x148   : > { %2087 = vrsqrt.f32 %v536_v13  ;;  %v530_v16 = vmul.f32 0.0625, %v522_v15 }
 0x149   : > { %v2078_v17 = vpop.eup %2077  ;;  %2089 = vrsqrt.f32 %v537_v14 }
 0x14a   : > { %v538_v19 = vadd.f32 1e-05, %v530_v16  ;;  %v547_v22 = vmul.f32 %v2078_v17, %v2335_v20 }
 0x14c   : > { %2091 = vrsqrt.f32 %v538_v19  ;;  %v561_v24 = vmul.f32 %v1855_v18, %v547_v22 }
 0x14d   : > { %v2080_v25 = vpop.eup %2079 }
 0x14e   : > { %v2082_v26 = vpop.eup %2081  ;;  %v575_v27 = vadd.f32 %v1856_v23, %v561_v24  ;;  %v548_v30 = vmul.f32 %v2080_v25, %v2343_v28 }
 0x14f   : > { %v549_v31 = vmul.f32 %v2082_v26, %v2337_v21 }
 0x150   : > { %1955 = vmatprep.mubr.msk.f32.mxu0 %vm449_vm0, %v575_v27  ;;  %v562_v32 = vmul.f32 %v1855_v18, %v548_v30 }
 0x151   : > { %v2084_v33 = vpop.eup %2083  ;;  %v563_v34 = vmul.f32 %v1855_v18, %v549_v31 }
 0x152   : > { %v2086_v35 = vpop.eup %2085  ;;  %v576_v20 = vadd.f32 %v1856_v23, %v562_v32  ;;  %v550_v36 = vmul.f32 %v2084_v33, %v2345_v29 }
 0x153   : > { %v577_v37 = vadd.f32 %v1856_v23, %v563_v34  ;;  %v551_v40 = vmul.f32 %v2086_v35, %v2353_v38 }
 0x154   : > { %1956 = vmatmul.mubr.msk.f32.vlgmr.msra.gmra.mxu0 %vm449_vm0, %v576_v20  ;;  %v564_v41 = vmul.f32 %v1855_v18, %v550_v36 }
 0x155   : > { %v2088_v42 = vpop.eup %2087  ;;  %1958 = vmatprep.mubr.msk.f32.mxu0 %vm449_vm0, %v577_v37  ;;  %v565_v28 = vmul.f32 %v1855_v18, %v551_v40 }
 0x156   : > { %v2090_v21 = vpop.eup %2089  ;;  %v578_v43 = vadd.f32 %v1856_v23, %v564_v41  ;;  %v552_v44 = vmul.f32 %v2088_v42, %v2355_v39 }
 0x157   : > { %v579_v45 = vadd.f32 %v1856_v23, %v565_v28  ;;  %v553_v46 = vmul.f32 %v2090_v21, %v2363_v48  ;;  %v1857_v48 = vld [vmem:[%s2673_s4] ss:$0 sm:$0xff] }
 0x158   : > { %1959 = vmatmul.mubr.msk.f32.gmra.mxu0 %vm449_vm0, %v578_v43  ;;  %v566_v29 = vmul.f32 %v1855_v18, %v552_v44 }
 0x159   : > { %v2092_v47 = vpop.eup %2091  ;;  %1961 = vmatprep.mubr.msk.f32.mxu0 %vm449_vm0, %v579_v45  ;;  %v567_v38 = vmul.f32 %v1855_v18, %v553_v46 }
 0x15a   : > { %v580_v50 = vadd.f32 %v1856_v23, %v566_v29  ;;  %v554_v51 = vmul.f32 %v2092_v47, %v2365_v49 }
 0x15b   : > { %v581_v52 = vadd.f32 %v1856_v23, %v567_v38 }
 0x15c   : > { %1962 = vmatmul.mubr.msk.f32.gmra.mxu0 %vm449_vm0, %v580_v50  ;;  %v568_v53 = vmul.f32 %v1855_v18, %v554_v51 }
 0x15d   : > { %1964 = vmatprep.mubr.msk.f32.mxu0 %vm449_vm0, %v581_v52 }
 0x15e   : > { %v582_v39 = vadd.f32 %v1856_v23, %v568_v53 }
 0x160   : > { %1965 = vmatmul.mubr.msk.f32.gmra.mxu0 %vm449_vm0, %v582_v39 }
 0x214   : > { %v1957_v54 = vpop.f32.mrf.mxu0 }
 0x215   : > { %v688_v55 = vadd.f32 %v1957_v54, %v1857_v48 }
 0x216   : > { %v682_v56 = vpop.f32.mrf.mxu0 }
 0x217   : > { %v722_v57 = vmax.f32 %v688_v55, 0.0  ;;  %v683_v58 = vadd.f32 %v1857_v48, %v682_v56 }
 0x218   : > { %v1960_v49 = vpop.f32.mrf.mxu0 }
 0x219   : > { %v721_v59 = vmax.f32 %v683_v58, 0.0  ;;  %v698_v60 = vadd.f32 %v1960_v49, %v1857_v48  ;;  %v735_v61 = vsel %vm731_vm1, %v722_v57, 0.0 }
 0x21a   : > { %736 = vadd.xlane.f32.xlu1 %v735_v61  ;;  %v692_v62 = vpop.f32.mrf.mxu0  ;;  %v868_v61 = vld [vmem:[%s2676_s7 + $0x18] sm:$0xff] }
 0x21b   : > { %v724_v63 = vmax.f32 %v698_v60, 0.0  ;;  %v693_v0 = vadd.f32 %v1857_v48, %v692_v62  ;;  %v732_v1 = vsel %vm731_vm1, %v721_v59, 0.0  ;;  %v867_v62 = vld [vmem:[%s2676_s7 + $0x10] sm:$0xff]  ;;  %1967 = vmatprep.subr.mxu1 %v868_v61 }
 0x21c   : > { %733 = vadd.xlane.f32.xlu0 %v732_v1  ;;  %v1963_v2 = vpop.f32.mrf.mxu0  ;;  %1968 = vmatpush3.msra.mxu1 %v868_v61 }
 0x21d   : > { %v723_v3 = vmax.f32 %v693_v0, 0.0  ;;  %v708_v4 = vadd.f32 %v1963_v2, %v1857_v48  ;;  %v741_v5 = vsel %vm731_vm1, %v724_v63, 0.0  ;;  %1969 = vmatprep.subr.mxu1 %v867_v62  ;;  %v865_v0 = vld [vmem:[%s2676_s7] sm:$0xff] }
 0x21e   : > { %742 = vadd.xlane.f32.xlu1 %v741_v5  ;;  %v702_v6 = vpop.f32.mrf.mxu0  ;;  %1970 = vmatpush3.msra.mxu1 %v867_v62 }
 0x21f   : > { %v726_v7 = vmax.f32 %v708_v4, 0.0  ;;  %v703_v8 = vadd.f32 %v1857_v48, %v702_v6  ;;  %v738_v9 = vsel %vm731_vm1, %v723_v3, 0.0 }
 0x220   : > { %739 = vadd.xlane.f32.xlu0 %v738_v9  ;;  %v1966_v10 = vpop.f32.mrf.mxu0 }
 0x221   : > { %v725_v11 = vmax.f32 %v703_v8, 0.0  ;;  %v718_v12 = vadd.f32 %v1966_v10, %v1857_v48  ;;  %v747_v13 = vsel %vm731_vm1, %v726_v7, 0.0 }
 0x222   : > { %748 = vadd.xlane.f32.xlu1 %v747_v13  ;;  %v712_v14 = vpop.f32.mrf.mxu0 }
 0x223   : > { %v728_v15 = vmax.f32 %v718_v12, 0.0  ;;  %v713_v16 = vadd.f32 %v1857_v48, %v712_v14  ;;  %v744_v17 = vsel %vm731_vm1, %v725_v11, 0.0 }
 0x224   : > { %745 = vadd.xlane.f32.xlu0 %v744_v17 }
 0x225   : > { %v727_v18 = vmax.f32 %v713_v16, 0.0  ;;  %v753_v19 = vsel %vm731_vm1, %v728_v15, 0.0 }
 0x226   : > { %754 = vadd.xlane.f32.xlu1 %v753_v19 }
 0x227   : > { %v750_v22 = vsel %vm731_vm1, %v727_v18, 0.0 }
 0x228   : > { %751 = vadd.xlane.f32.xlu0 %v750_v22 }
 0x2a3   : > { %v737_v23 = vpop.xlane.xlu1 %736 }
 0x2a4   : > { %v758_v24 = vmul.f32 0.03125, %v737_v23 }
 0x2a5   : > { %v734_v25 = vpop.xlane.xlu0 %733 }
 0x2a6   : > { %v2414_v26 = vsub.f32 %v722_v57, %v758_v24  ;;  %v757_v27 = vmul.f32 0.03125, %v734_v25 }
 0x2a7   : > { %v743_v30 = vpop.xlane.xlu1 %742 }
 0x2a8   : > { %v2416_v31 = vsub.f32 %v721_v59, %v757_v27  ;;  %v760_v32 = vmul.f32 0.03125, %v743_v30  ;;  %v774_v33 = vmul.f32 %v2414_v26, %v2414_v26 }
 0x2a9   : > { %v740_v34 = vpop.xlane.xlu0 %739 }
 0x2aa   : > { %v2420_v35 = vsub.f32 %v724_v63, %v760_v32  ;;  %v759_v20 = vmul.f32 0.03125, %v740_v34  ;;  %v784_v36 = vsel %vm731_vm1, %v774_v33, 0.0  ;;  %v773_v37 = vmul.f32 %v2416_v31, %v2416_v31  ;;  %v866_v63 = vld [vmem:[%s2676_s7 + $0x8] sm:$0xff]  ;;  %v1866_v32 = vld [vmem:[%s2674_s5] ss:$0 sm:$0xff] }
 0x2ab   : > { %v749_v40 = vpop.xlane.xlu1 %748  ;;  %785 = vadd.xlane.f32.xlu1 %v784_v36  ;;  %1971 = vmatprep.subr.mxu1 %v866_v63 }
 0x2ac   : > { %v2425_v41 = vsub.f32 %v723_v3, %v759_v20  ;;  %v762_v42 = vmul.f32 0.03125, %v749_v40  ;;  %v781_v28 = vsel %vm731_vm1, %v773_v37, 0.0  ;;  %v776_v21 = vmul.f32 %v2420_v35, %v2420_v35  ;;  %1972 = vmatpush3.msra.mxu1 %v866_v63  ;;  %v1867_v40 = vld [vmem:[%s2675_s6] ss:$0 sm:$0xff] }
 0x2ad   : > { %782 = vadd.xlane.f32.xlu0 %v781_v28  ;;  %v746_v43 = vpop.xlane.xlu0 %745  ;;  %1973 = vmatprep.subr.mxu1 %v865_v0 }
 0x2ae   : > { %v2430_v44 = vsub.f32 %v726_v7, %v762_v42  ;;  %v761_v45 = vmul.f32 0.03125, %v746_v43  ;;  %v790_v46 = vsel %vm731_vm1, %v776_v21, 0.0  ;;  %v775_v29 = vmul.f32 %v2425_v41, %v2425_v41  ;;  %1974 = vmatpush3.msra.mxu1 %v865_v0 }
 0x2af   : > { %791 = vadd.xlane.f32.xlu1 %v790_v46  ;;  %v755_v47 = vpop.xlane.xlu1 %754 }
 0x2b0   : > { %v2435_v38 = vsub.f32 %v725_v11, %v761_v45  ;;  %v764_v50 = vmul.f32 0.03125, %v755_v47  ;;  %v787_v51 = vsel %vm731_vm1, %v775_v29, 0.0  ;;  %v778_v52 = vmul.f32 %v2430_v44, %v2430_v44 }
 0x2b1   : > { %788 = vadd.xlane.f32.xlu0 %v787_v51  ;;  %v752_v53 = vpop.xlane.xlu0 %751 }
 0x2b2   : > { %v2440_v39 = vsub.f32 %v728_v15, %v764_v50  ;;  %v763_v48 = vmul.f32 0.03125, %v752_v53  ;;  %v796_v54 = vsel %vm731_vm1, %v778_v52, 0.0  ;;  %v777_v55 = vmul.f32 %v2435_v38, %v2435_v38 }
 0x2b3   : > { %797 = vadd.xlane.f32.xlu1 %v796_v54 }
 0x2b4   : > { %v2445_v56 = vsub.f32 %v727_v18, %v763_v48  ;;  %v793_v57 = vsel %vm731_vm1, %v777_v55, 0.0  ;;  %v780_v58 = vmul.f32 %v2440_v39, %v2440_v39 }
 0x2b5   : > { %794 = vadd.xlane.f32.xlu0 %v793_v57 }
 0x2b6   : > { %v802_v49 = vsel %vm731_vm1, %v780_v58, 0.0  ;;  %v779_v59 = vmul.f32 %v2445_v56, %v2445_v56 }
 0x2b7   : > { %803 = vadd.xlane.f32.xlu1 %v802_v49 }
 0x2b8   : > { %v799_v60 = vsel %vm731_vm1, %v779_v59, 0.0 }
 0x2b9   : > { %800 = vadd.xlane.f32.xlu0 %v799_v60 }
 0x334   : > { %v786_v1 = vpop.xlane.xlu1 %785 }
 0x335   : > { %v806_v2 = vmul.f32 0.03125, %v786_v1 }
 0x336   : > { %v783_v3 = vpop.xlane.xlu0 %782 }
 0x337   : > { %v814_v4 = vadd.f32 1e-05, %v806_v2  ;;  %v805_v5 = vmul.f32 0.03125, %v783_v3 }
 0x338   : > { %v792_v6 = vpop.xlane.xlu1 %791 }
 0x339   : > { %2093 = vrsqrt.f32 %v814_v4  ;;  %v813_v7 = vadd.f32 1e-05, %v805_v5  ;;  %v808_v8 = vmul.f32 0.03125, %v792_v6 }
 0x33a   : > { %v789_v9 = vpop.xlane.xlu0 %788 }
 0x33b   : > { %2095 = vrsqrt.f32 %v813_v7  ;;  %v816_v10 = vadd.f32 1e-05, %v808_v8  ;;  %v807_v11 = vmul.f32 0.03125, %v789_v9 }
 0x33c   : > { %v798_v12 = vpop.xlane.xlu1 %797 }
 0x33d   : > { %2097 = vrsqrt.f32 %v816_v10  ;;  %v815_v13 = vadd.f32 1e-05, %v807_v11  ;;  %v810_v14 = vmul.f32 0.03125, %v798_v12  ;;  %v1303_v12 = vld [vmem:[%s2678_s9] sm:$0xff] }
 0x33e   : > { %v795_v15 = vpop.xlane.xlu0 %794  ;;  %1987 = vmatprep.subr.mxu0 %v1303_v12 }
 0x33f   : > { %2099 = vrsqrt.f32 %v815_v13  ;;  %v818_v16 = vadd.f32 1e-05, %v810_v14  ;;  %v809_v17 = vmul.f32 0.03125, %v795_v15  ;;  %1988 = vmatpush3.msra.mxu0 %v1303_v12 }
 0x340   : > { %v804_v18 = vpop.xlane.xlu1 %803 }
 0x341   : > { %2101 = vrsqrt.f32 %v818_v16  ;;  %v817_v19 = vadd.f32 1e-05, %v809_v17  ;;  %v812_v22 = vmul.f32 0.03125, %v804_v18 }
 0x342   : > { %v801_v23 = vpop.xlane.xlu0 %800 }
 0x343   : > { %2103 = vrsqrt.f32 %v817_v19  ;;  %v820_v24 = vadd.f32 1e-05, %v812_v22  ;;  %v811_v25 = vmul.f32 0.03125, %v801_v23 }
 0x345   : > { %2105 = vrsqrt.f32 %v820_v24  ;;  %v819_v27 = vadd.f32 1e-05, %v811_v25 }
 0x346   : > { %v2094_v30 = vpop.eup %2093 }
 0x347   : > { %2107 = vrsqrt.f32 %v819_v27  ;;  %v830_v33 = vmul.f32 %v2094_v30, %v2414_v26 }
 0x348   : > { %v2096_v34 = vpop.eup %2095 }
 0x349   : > { %v829_v20 = vmul.f32 %v2096_v34, %v2416_v31  ;;  %v844_v37 = vmul.f32 %v1866_v32, %v830_v33 }
 0x34a   : > { %v2098_v36 = vpop.eup %2097 }
 0x34b   : > { %v843_v42 = vmul.f32 %v1866_v32, %v829_v20  ;;  %v832_v28 = vmul.f32 %v2098_v36, %v2420_v35  ;;  %v858_v29 = vadd.f32 %v1867_v40, %v844_v37  ;;  %v1459_v20 = vld [vmem:[%s2680_s11 + $0x58] sm:$0xff]  ;;  %v1458_v36 = vld [vmem:[%s2680_s11 + $0x50] sm:$0xff]  ;;  %v1457_v37 = vld [vmem:[%s2680_s11 + $0x48] sm:$0xff] }
 0x34c   : > { %v2100_v21 = vpop.eup %2099  ;;  %2001 = vmatprep.subr.mxu1 %v1459_v20 }
 0x34d   : > { %v857_v43 = vadd.f32 %v1867_v40, %v843_v42  ;;  %v831_v45 = vmul.f32 %v2100_v21, %v2425_v41  ;;  %v846_v47 = vmul.f32 %v1866_v32, %v832_v28  ;;  %v1455_v42 = vld [vmem:[%s2680_s11 + $0x38] sm:$0xff]  ;;  %v1454_v28 = vld [vmem:[%s2680_s11 + $0x30] sm:$0xff]  ;;  %v1453_v21 = vld [vmem:[%s2680_s11 + $0x28] sm:$0xff] }
 0x34e   : > { %v2102_v46 = vpop.eup %2101 }
 0x34f   : > { %1975 = vmatprep.mubr.msk.f32.mxu1 %vm731_vm1, %v857_v43  ;;  %v845_v26 = vmul.f32 %v1866_v32, %v831_v45  ;;  %v834_v31 = vmul.f32 %v2102_v46, %v2430_v44  ;;  %v860_v35 = vadd.f32 %v1867_v40, %v846_v47  ;;  %v1452_v43 = vld [vmem:[%s2680_s11 + $0x20] sm:$0xff] }
 0x350   : > { %v2104_v50 = vpop.eup %2103  ;;  %1976 = vmatmul.mubr.msk.f32.vlgmr.msra.gmra.mxu1 %vm731_vm1, %v858_v29 }
 0x351   : > { %v859_v51 = vadd.f32 %v1867_v40, %v845_v26  ;;  %v833_v52 = vmul.f32 %v2104_v50, %v2435_v38  ;;  %v848_v48 = vmul.f32 %v1866_v32, %v834_v31  ;;  %2002 = vmatpush3.msra.mxu1 %v1459_v20 }
 0x352   : > { %v2106_v53 = vpop.eup %2105  ;;  %2003 = vmatprep.subr.mxu1 %v1458_v36 }
 0x353   : > { %1978 = vmatprep.mubr.msk.f32.mxu1 %vm731_vm1, %v859_v51  ;;  %v847_v41 = vmul.f32 %v1866_v32, %v833_v52  ;;  %v836_v54 = vmul.f32 %v2106_v53, %v2440_v39  ;;  %v862_v58 = vadd.f32 %v1867_v40, %v848_v48  ;;  %v1868_v39 = vld [vmem:[%s2677_s8] ss:$0 sm:$0xff]  ;;  %2004 = vmatpush3.msra.mxu1 %v1458_v36 }
 0x354   : > { %v2108_v55 = vpop.eup %2107  ;;  %1979 = vmatmul.mubr.msk.f32.gmra.mxu1 %vm731_vm1, %v860_v35  ;;  %2005 = vmatprep.subr.mxu1 %v1457_v37 }
 0x355   : > { %v861_v57 = vadd.f32 %v1867_v40, %v847_v41  ;;  %v835_v44 = vmul.f32 %v2108_v55, %v2445_v56  ;;  %v850_v49 = vmul.f32 %v1866_v32, %v836_v54  ;;  %2006 = vmatpush3.msra.mxu1 %v1457_v37 }
 0x357   : > { %1981 = vmatprep.mubr.msk.f32.mxu1 %vm731_vm1, %v861_v57  ;;  %v849_v59 = vmul.f32 %v1866_v32, %v835_v44  ;;  %v864_v60 = vadd.f32 %v1867_v40, %v850_v49 }
 0x358   : > { %1982 = vmatmul.mubr.msk.f32.gmra.mxu1 %vm731_vm1, %v862_v58 }
 0x359   : > { %v863_v38 = vadd.f32 %v1867_v40, %v849_v59  ;;  %v1456_v40 = vld [vmem:[%s2680_s11 + $0x40] sm:$0xff] }
 0x35a   : > { %2007 = vmatprep.subr.mxu1 %v1456_v40 }
 0x35b   : > { %1984 = vmatprep.mubr.msk.f32.mxu1 %vm731_vm1, %v863_v38  ;;  %2008 = vmatpush3.msra.mxu1 %v1456_v40 }
 0x35c   : > { %1985 = vmatmul.mubr.msk.f32.gmra.mxu1 %vm731_vm1, %v864_v60  ;;  %2009 = vmatprep.subr.mxu1 %v1455_v42 }
 0x35d   : > { %2010 = vmatpush3.msra.mxu1 %v1455_v42 }
 0x35e   : > { %2011 = vmatprep.subr.mxu1 %v1454_v28 }
 0x35f   : > { %2012 = vmatpush3.msra.mxu1 %v1454_v28  ;;  %v1886_v28 = vld [vmem:[%s2681_s12] ss:$0 sm:$0xff] }
 0x360   : > { %2013 = vmatprep.subr.mxu1 %v1453_v21 }
 0x361   : > { %2014 = vmatpush3.msra.mxu1 %v1453_v21 }
 0x362   : > { %2015 = vmatprep.subr.mxu1 %v1452_v43 }
 0x363   : > { %2016 = vmatpush3.msra.mxu1 %v1452_v43 }
 0x410   : > { %v1977_v61 = vpop.f32.mrf.mxu1 }
 0x411   : > { %v972_v62 = vadd.f32 %v1977_v61, %v1868_v39 }
 0x412   : > { %v966_v56 = vpop.f32.mrf.mxu1 }
 0x413   : > { %v967_v63 = vadd.f32 %v1868_v39, %v966_v56  ;;  %1037 = vxpose.xlu1.b32.start.end [1/1] (short) (narrow) %v972_v62, 8  ;;  %v1451_v62 = vld [vmem:[%s2680_s11 + $0x18] sm:$0xff]  ;;  %v1450_v56 = vld [vmem:[%s2680_s11 + $0x10] sm:$0xff] }
 0x414   : > { %v1980_v0 = vpop.f32.mrf.mxu1  ;;  %2017 = vmatprep.subr.mxu1 %v1451_v62 }
 0x415   : > { %1005 = vxpose.xlu0.b32.start.end [1/1] (short) (narrow) %v967_v63, 8  ;;  %v982_v2 = vadd.f32 %v1980_v0, %v1868_v39  ;;  %2018 = vmatpush3.msra.mxu1 %v1451_v62  ;;  %v1449_v63 = vld [vmem:[%s2680_s11 + $0x8] sm:$0xff]  ;;  %v1448_v0 = vld [vmem:[%s2680_s11] sm:$0xff] }
 0x416   : > { %v976_v1 = vpop.f32.mrf.mxu1  ;;  %2019 = vmatprep.subr.mxu1 %v1450_v56 }
 0x417   : > { %v977_v5 = vadd.f32 %v1868_v39, %v976_v1  ;;  %2020 = vmatpush3.msra.mxu1 %v1450_v56  ;;  %v1877_v1 = vld [vmem:[%s2679_s10] ss:$0 sm:$0xff] }
 0x418   : > { %v1983_v3 = vpop.f32.mrf.mxu1  ;;  %2021 = vmatprep.subr.mxu1 %v1449_v63 }
 0x419   : > { %1101 = vxpose.xlu0.b32.start.end [1/1] (short) (narrow) %v982_v2, 8  ;;  %v992_v9 = vadd.f32 %v1983_v3, %v1868_v39  ;;  %2022 = vmatpush3.msra.mxu1 %v1449_v63 }
 0x41a   : > { %v986_v4 = vpop.f32.mrf.mxu1  ;;  %2023 = vmatprep.subr.mxu1 %v1448_v0 }
 0x41b   : > { %v987_v6 = vadd.f32 %v1868_v39, %v986_v4  ;;  %2024 = vmatpush3.msra.mxu1 %v1448_v0 }
 0x41c   : > { %v1986_v7 = vpop.f32.mrf.mxu1 }
 0x41d   : > { %1069 = vxpose.xlu0.b32.start.end [1/1] (short) (narrow) %v977_v5, 8  ;;  %1133 = vxpose.xlu1.b32.start.end [1/1] (short) (narrow) %v987_v6, 8  ;;  %v1002_v11 = vadd.f32 %v1986_v7, %v1868_v39 }
 0x41e   : > { %v996_v8 = vpop.f32.mrf.mxu1 }
 0x41f   : > { %v997_v10 = vadd.f32 %v1868_v39, %v996_v8 }
 0x421   : > { %1165 = vxpose.xlu0.b32.start.end [1/1] (short) (narrow) %v992_v9, 8  ;;  %1197 = vxpose.xlu1.b32.start.end [1/1] (short) (narrow) %v997_v10, 8 }
 0x425   : > { %1229 = vxpose.xlu0.b32.start.end [1/1] (short) (narrow) %v1002_v11, 8 }
 0x48f   : > { %v2494_v13 = vpop.trf.xlu1 }
 0x490   : > { %v1265_v14 = vsel %vm1261_vm2, %v2494_v13, 0.0 }
 0x491   : > { %1266 = vadd.xlane.f32.xlu0 %v1265_v14  ;;  %v2498_v15 = vpop.trf.xlu0 }
 0x492   : > { %v1262_v16 = vsel %vm1261_vm2, %v2498_v15, 0.0 }
 0x493   : > { %1263 = vadd.xlane.f32.xlu1 %v1262_v16 }
 0x495   : > { %v2502_v17 = vpop.trf.xlu0 }
 0x496   : > { %v1271_v30 = vsel %vm1261_vm2, %v2502_v17, 0.0 }
 0x499   : > { %v2504_v18 = vpop.trf.xlu1  ;;  %v2506_v19 = vpop.trf.xlu0 }
 0x49a   : > { %v1274_v22 = vsel %vm1261_vm2, %v2504_v18, 0.0  ;;  %v1268_v23 = vsel %vm1261_vm2, %v2506_v19, 0.0 }
 0x49b   : > { %1275 = vadd.xlane.f32.xlu0 %v1274_v22  ;;  %1269 = vadd.xlane.f32.xlu1 %v1268_v23 }
 0x49d   : > { %v2512_v24 = vpop.trf.xlu1  ;;  %v2514_v25 = vpop.trf.xlu0 }
 0x49e   : > { %v1280_v27 = vsel %vm1261_vm2, %v2512_v24, 0.0  ;;  %v1277_v32 = vsel %vm1261_vm2, %v2514_v25, 0.0 }
 0x49f   : > { %1281 = vadd.xlane.f32.xlu0 %v1280_v27  ;;  %1272 = vadd.xlane.f32.xlu1 %v1271_v30 }
 0x4a1   : > { %v2522_v33 = vpop.trf.xlu0 }
 0x4a2   : > { %v1283_v34 = vsel %vm1261_vm2, %v2522_v33, 0.0 }
 0x4a3   : > { %1278 = vadd.xlane.f32.xlu1 %v1277_v32 }
 0x4a7   : > { %1284 = vadd.xlane.f32.xlu1 %v1283_v34 }
 0x51a   : > { %v1267_v45 = vpop.xlane.xlu0 %1266 }
 0x51b   : > { %v1288_v46 = vmul.f32 0.125, %v1267_v45 }
 0x51c   : > { %v1264_v29 = vpop.xlane.xlu1 %1263 }
 0x51d   : > { %v1287_v47 = vmul.f32 0.125, %v1264_v29  ;;  %v1296_v31 = vadd.f32 %v1288_v46, %v2494_v13 }
 0x51f   : > { %v1295_v26 = vadd.f32 %v1287_v47, %v2498_v15 }
 0x521   : > { %1989 = vmatprep.mubr.msk.f32.mxu0 %vm1261_vm2, %v1295_v26 }
 0x522   : > { %1990 = vmatmul.mubr.msk.f32.vlgmr.msra.gmra.mxu0 %vm1261_vm2, %v1296_v31 }
 0x524   : > { %v1270_v50 = vpop.xlane.xlu1 %1269  ;;  %v1276_v51 = vpop.xlane.xlu0 %1275 }
 0x525   : > { %v1289_v52 = vmul.f32 0.125, %v1270_v50  ;;  %v1291_v35 = vmul.f32 0.125, %v1276_v51 }
 0x527   : > { %v1297_v53 = vadd.f32 %v1289_v52, %v2506_v19  ;;  %v1299_v57 = vadd.f32 %v1291_v35, %v2504_v18 }
 0x528   : > { %v1273_v48 = vpop.xlane.xlu1 %1272  ;;  %v1282_v54 = vpop.xlane.xlu0 %1281 }
 0x529   : > { %v1290_v41 = vmul.f32 0.125, %v1273_v48  ;;  %1992 = vmatprep.mubr.msk.f32.mxu0 %vm1261_vm2, %v1297_v53  ;;  %v1293_v44 = vmul.f32 0.125, %v1282_v54 }
 0x52b   : > { %v1298_v55 = vadd.f32 %v1290_v41, %v2502_v17  ;;  %v1301_v38 = vadd.f32 %v1293_v44, %v2512_v24 }
 0x52c   : > { %v1279_v58 = vpop.xlane.xlu1 %1278 }
 0x52d   : > { %v1292_v49 = vmul.f32 0.125, %v1279_v58  ;;  %1993 = vmatmul.mubr.msk.f32.gmra.mxu0 %vm1261_vm2, %v1298_v55 }
 0x52e   : > { %1995 = vmatprep.mubr.msk.f32.mxu0 %vm1261_vm2, %v1299_v57 }
 0x52f   : > { %v1300_v59 = vadd.f32 %v1292_v49, %v2514_v25 }
 0x530   : > { %v1285_v60 = vpop.xlane.xlu1 %1284 }
 0x531   : > { %v1294_v39 = vmul.f32 0.125, %v1285_v60  ;;  %1996 = vmatmul.mubr.msk.f32.gmra.mxu0 %vm1261_vm2, %v1300_v59 }
 0x532   : > { %1998 = vmatprep.mubr.msk.f32.mxu0 %vm1261_vm2, %v1301_v38 }
 0x533   : > { %v1302_v61 = vadd.f32 %v1294_v39, %v2522_v33 }
 0x535   : > { %1999 = vmatmul.mubr.msk.f32.gmra.mxu0 %vm1261_vm2, %v1302_v61 }
 0x5e2   : > { %v1991_v2 = vpop.f32.mrf.mxu0 }
 0x5e3   : > { %v1407_v3 = vadd.f32 %v1991_v2, %v1877_v1 }
 0x5e4   : > { %v1401_v4 = vpop.f32.mrf.mxu0 }
 0x5e5   : > { %v1402_v5 = vadd.f32 %v1877_v1, %v1401_v4  ;;  %v1441_v7 = vmax.f32 %v1407_v3, 0.0 }
 0x5e7   : > { %v1440_v6 = vmax.f32 %v1402_v5, 0.0 }
 0x5e9   : > { %2025 = vmatprep.mubr.msk.f32.mxu1 %vm1467_vm3, %v1440_v6 }
 0x5ea   : > { %2026 = vmatmul.mubr.msk.f32.vlgmr.msra.gmra.mxu1 %vm1467_vm3, %v1441_v7 }
 0x5ed   : > { %v1994_v8 = vpop.f32.mrf.mxu0 }
 0x5ee   : > { %v1417_v9 = vadd.f32 %v1994_v8, %v1877_v1 }
 0x5ef   : > { %v1411_v10 = vpop.f32.mrf.mxu0 }
 0x5f0   : > { %v1412_v11 = vadd.f32 %v1877_v1, %v1411_v10  ;;  %v1443_v16 = vmax.f32 %v1417_v9, 0.0 }
 0x5f1   : > { %v1997_v12 = vpop.f32.mrf.mxu0 }
 0x5f2   : > { %v1442_v14 = vmax.f32 %v1412_v11, 0.0  ;;  %v1427_v22 = vadd.f32 %v1997_v12, %v1877_v1 }
 0x5f3   : > { %v1421_v23 = vpop.f32.mrf.mxu0 }
 0x5f4   : > { %v1422_v27 = vadd.f32 %v1877_v1, %v1421_v23  ;;  %2028 = vmatprep.mubr.msk.f32.mxu1 %vm1467_vm3, %v1442_v14  ;;  %v1445_v34 = vmax.f32 %v1427_v22, 0.0 }
 0x5f5   : > { %v2000_v30 = vpop.f32.mrf.mxu0  ;;  %2029 = vmatmul.mubr.msk.f32.gmra.mxu1 %vm1467_vm3, %v1443_v16 }
 0x5f6   : > { %v1444_v32 = vmax.f32 %v1422_v27, 0.0  ;;  %v1437_v20 = vadd.f32 %v2000_v30, %v1877_v1 }
 0x5f7   : > { %v1431_v36 = vpop.f32.mrf.mxu0 }
 0x5f8   : > { %v1432_v37 = vadd.f32 %v1877_v1, %v1431_v36  ;;  %2031 = vmatprep.mubr.msk.f32.mxu1 %vm1467_vm3, %v1444_v32  ;;  %v1447_v42 = vmax.f32 %v1437_v20, 0.0 }
 0x5f9   : > { %2032 = vmatmul.mubr.msk.f32.gmra.mxu1 %vm1467_vm3, %v1445_v34 }
 0x5fa   : > { %v1446_v40 = vmax.f32 %v1432_v37, 0.0 }
 0x5fc   : > { %2034 = vmatprep.mubr.msk.f32.mxu1 %vm1467_vm3, %v1446_v40 }
 0x5fd   : > { %2035 = vmatmul.mubr.msk.f32.gmra.mxu1 %vm1467_vm3, %v1447_v42 }
 0x6aa   : > { %v2027_v21 = vpop.f32.mrf.mxu1 }
 0x6ab   : > { %v1564_v43 = vadd.f32 %v2027_v21, %v1886_v28 }
 0x6ac   : > { %v1558_v45 = vpop.f32.mrf.mxu1 }
 0x6ad   : > { %v1559_v46 = vadd.f32 %v1886_v28, %v1558_v45  ;;  %v1600_v29 = vsel %vm1261_vm2, %v1564_v43, -inf }
 0x6ae   : > { %1601 = vmax.xlane.f32.xlu1 %v1600_v29 }
 0x6af   : > { %v1597_v47 = vsel %vm1261_vm2, %v1559_v46, -inf }
 0x6b0   : > { %1598 = vmax.xlane.f32.xlu0 %v1597_v47 }
 0x6b5   : > { %v2030_v26 = vpop.f32.mrf.mxu1 }
 0x6b6   : > { %v1574_v31 = vadd.f32 %v2030_v26, %v1886_v28 }
 0x6b7   : > { %v1568_v50 = vpop.f32.mrf.mxu1 }
 0x6b8   : > { %v1569_v51 = vadd.f32 %v1886_v28, %v1568_v50  ;;  %v1606_v52 = vsel %vm1261_vm2, %v1574_v31, -inf }
 0x6b9   : > { %1607 = vmax.xlane.f32.xlu1 %v1606_v52  ;;  %v2033_v53 = vpop.f32.mrf.mxu1 }
 0x6ba   : > { %v1584_v35 = vadd.f32 %v2033_v53, %v1886_v28  ;;  %v1603_v48 = vsel %vm1261_vm2, %v1569_v51, -inf }
 0x6bb   : > { %1604 = vmax.xlane.f32.xlu0 %v1603_v48  ;;  %v1578_v41 = vpop.f32.mrf.mxu1 }
 0x6bc   : > { %v1579_v54 = vadd.f32 %v1886_v28, %v1578_v41  ;;  %v1612_v55 = vsel %vm1261_vm2, %v1584_v35, -inf }
 0x6bd   : > { %1613 = vmax.xlane.f32.xlu1 %v1612_v55  ;;  %v2036_v57 = vpop.f32.mrf.mxu1 }
 0x6be   : > { %v1594_v44 = vadd.f32 %v2036_v57, %v1886_v28  ;;  %v1609_v58 = vsel %vm1261_vm2, %v1579_v54, -inf }
 0x6bf   : > { %1610 = vmax.xlane.f32.xlu0 %v1609_v58  ;;  %v1588_v49 = vpop.f32.mrf.mxu1 }
 0x6c0   : > { %v1589_v59 = vadd.f32 %v1886_v28, %v1588_v49  ;;  %v1618_v38 = vsel %vm1261_vm2, %v1594_v44, -inf }
 0x6c1   : > { %1619 = vmax.xlane.f32.xlu1 %v1618_v38 }
 0x6c2   : > { %v1615_v60 = vsel %vm1261_vm2, %v1589_v59, -inf }
 0x6c3   : > { %1616 = vmax.xlane.f32.xlu0 %v1615_v60 }
 0x737   : > { %v1602_v39 = vpop.xlane.xlu1 %1601 }
 0x738   : > { %v1622_v61 = vsub.f32 %v1564_v43, %v1602_v39 }
 0x739   : > { %v1599_v62 = vpop.xlane.xlu0 %1598 }
 0x73a   : > { %v1631_v56 = vmul.f32 1.442695, %v1622_v61  ;;  %v1621_v63 = vsub.f32 %v1559_v46, %v1599_v62 }
 0x73c   : > { %2109 = vpow2.f32 %v1631_v56  ;;  %v1629_v0 = vmul.f32 1.442695, %v1621_v63 }
 0x73e   : > { %2111 = vpow2.f32 %v1629_v0 }
 0x742   : > { %v1608_v1 = vpop.xlane.xlu1 %1607 }
 0x743   : > { %v1624_v2 = vsub.f32 %v1574_v31, %v1608_v1 }
 0x744   : > { %v1605_v3 = vpop.xlane.xlu0 %1604 }
 0x745   : > { %v1635_v4 = vmul.f32 1.442695, %v1624_v2  ;;  %v1623_v5 = vsub.f32 %v1569_v51, %v1605_v3 }
 0x746   : > { %v1614_v6 = vpop.xlane.xlu1 %1613 }
 0x747   : > { %2113 = vpow2.f32 %v1635_v4  ;;  %v1633_v7 = vmul.f32 1.442695, %v1623_v5  ;;  %v1626_v8 = vsub.f32 %v1584_v35, %v1614_v6 }
 0x748   : > { %v1611_v9 = vpop.xlane.xlu0 %1610 }
 0x749   : > { %v2110_v10 = vpop.eup %2109  ;;  %2115 = vpow2.f32 %v1633_v7  ;;  %v1639_v11 = vmul.f32 1.442695, %v1626_v8  ;;  %v1625_v12 = vsub.f32 %v1579_v54, %v1611_v9 }
 0x74a   : > { %v1620_v14 = vpop.xlane.xlu1 %1619  ;;  %v1648_v16 = vsel %vm1261_vm2, %v2110_v10, 0.0 }
 0x74b   : > { %v2112_v22 = vpop.eup %2111  ;;  %2117 = vpow2.f32 %v1639_v11  ;;  %v1637_v23 = vmul.f32 1.442695, %v1625_v12  ;;  %v1628_v27 = vsub.f32 %v1594_v44, %v1620_v14  ;;  %1649 = vadd.xlane.f32.xlu1 %v1648_v16  ;;  %v1725_v16 = vlaneseq }
 0x74c   : > { %v1617_v30 = vpop.xlane.xlu0 %1616  ;;  %v1645_v32 = vsel %vm1261_vm2, %v2112_v22, 0.0 }
 0x74d   : > { %2119 = vpow2.f32 %v1637_v23  ;;  %v1643_v34 = vmul.f32 1.442695, %v1628_v27  ;;  %v1627_v20 = vsub.f32 %v1589_v59, %v1617_v30  ;;  %1646 = vadd.xlane.f32.xlu0 %v1645_v32 }
 0x74f   : > { %2121 = vpow2.f32 %v1643_v34  ;;  %v1641_v36 = vmul.f32 1.442695, %v1627_v20 }
 0x751   : > { %2123 = vpow2.f32 %v1641_v36 }
 0x754   : > { %v2114_v37 = vpop.eup %2113 }
 0x755   : > { %v1654_v40 = vsel %vm1261_vm2, %v2114_v37, 0.0 }
 0x756   : > { %v2116_v42 = vpop.eup %2115  ;;  %1655 = vadd.xlane.f32.xlu1 %v1654_v40 }
 0x757   : > { %v1651_v28 = vsel %vm1261_vm2, %v2116_v42, 0.0 }
 0x758   : > { %v2118_v21 = vpop.eup %2117  ;;  %1652 = vadd.xlane.f32.xlu0 %v1651_v28 }
 0x759   : > { %v1660_v43 = vsel %vm1261_vm2, %v2118_v21, 0.0 }
 0x75a   : > { %v2120_v45 = vpop.eup %2119  ;;  %1661 = vadd.xlane.f32.xlu1 %v1660_v43 }
 0x75b   : > { %v1657_v46 = vsel %vm1261_vm2, %v2120_v45, 0.0 }
 0x75c   : > { %v2122_v29 = vpop.eup %2121  ;;  %1658 = vadd.xlane.f32.xlu0 %v1657_v46 }
 0x75d   : > { %v1666_v47 = vsel %vm1261_vm2, %v2122_v29, 0.0 }
 0x75e   : > { %v2124_v26 = vpop.eup %2123  ;;  %1667 = vadd.xlane.f32.xlu1 %v1666_v47 }
 0x75f   : > { %v1663_v31 = vsel %vm1261_vm2, %v2124_v26, 0.0 }
 0x760   : > { %1664 = vadd.xlane.f32.xlu0 %v1663_v31 }
 0x7d4   : > { %v1650_v50 = vpop.xlane.xlu1 %1649 }
 0x7d5   : > { %2125 = vrcp.f32 %v1650_v50 }
 0x7d6   : > { %v1647_v51 = vpop.xlane.xlu0 %1646 }
 0x7d7   : > { %2127 = vrcp.f32 %v1647_v51 }
 0x7df   : > { %v1656_v52 = vpop.xlane.xlu1 %1655 }
 0x7e0   : > { %2129 = vrcp.f32 %v1656_v52 }
 0x7e1   : > { %v1653_v53 = vpop.xlane.xlu0 %1652 }
 0x7e2   : > { %v2126_v35 = vpop.eup %2125  ;;  %2131 = vrcp.f32 %v1653_v53 }
 0x7e3   : > { %v1662_v48 = vpop.xlane.xlu1 %1661  ;;  %v1678_v41 = vmul.f32 %v2126_v35, %v2110_v10 }
 0x7e4   : > { %v2128_v54 = vpop.eup %2127  ;;  %2133 = vrcp.f32 %v1662_v48 }
 0x7e5   : > { %v1659_v55 = vpop.xlane.xlu0 %1658  ;;  %v1686_v57 = vmul.f32 %v1678_v41, %v2494_v13  ;;  %v1677_v44 = vmul.f32 %v2128_v54, %v2112_v22  ;;  %v1728_v22 = vshrl.u32 %v1725_v16, 7 }
 0x7e6   : > { %2135 = vrcp.f32 %v1659_v55 }
 0x7e7   : > { %v1668_v58 = vpop.xlane.xlu1 %1667  ;;  %v1696_v49 = vsel %vm1261_vm2, %v1686_v57, 0.0  ;;  %v1685_v59 = vmul.f32 %v1677_v44, %v2498_v15 }
 0x7e8   : > { %2137 = vrcp.f32 %v1668_v58  ;;  %1697 = vadd.xlane.f32.xlu1 %v1696_v49 }
 0x7e9   : > { %v1665_v38 = vpop.xlane.xlu0 %1664  ;;  %v1693_v60 = vsel %vm1261_vm2, %v1685_v59, 0.0 }
 0x7ea   : > { %2139 = vrcp.f32 %v1665_v38  ;;  %1694 = vadd.xlane.f32.xlu0 %v1693_v60 }
 0x7ed   : > { %v2130_v39 = vpop.eup %2129 }
 0x7ee   : > { %v1680_v61 = vmul.f32 %v2130_v39, %v2114_v37 }
 0x7ef   : > { %v2132_v62 = vpop.eup %2131 }
 0x7f0   : > { %v1688_v56 = vmul.f32 %v1680_v61, %v2502_v17  ;;  %v1679_v13 = vmul.f32 %v2132_v62, %v2116_v42 }
 0x7f1   : > { %v2134_v63 = vpop.eup %2133 }
 0x7f2   : > { %v1702_v0 = vsel %vm1261_vm2, %v1688_v56, 0.0  ;;  %v1687_v1 = vmul.f32 %v1679_v13, %v2506_v19  ;;  %v1682_v2 = vmul.f32 %v2134_v63, %v2118_v21 }
 0x7f3   : > { %v2136_v15 = vpop.eup %2135  ;;  %1703 = vadd.xlane.f32.xlu1 %v1702_v0 }
 0x7f4   : > { %v1699_v3 = vsel %vm1261_vm2, %v1687_v1, 0.0  ;;  %v1690_v4 = vmul.f32 %v1682_v2, %v2514_v25  ;;  %v1681_v5 = vmul.f32 %v2136_v15, %v2120_v45 }
 0x7f5   : > { %v2138_v6 = vpop.eup %2137  ;;  %1700 = vadd.xlane.f32.xlu0 %v1699_v3 }
 0x7f6   : > { %v1708_v7 = vsel %vm1261_vm2, %v1690_v4, 0.0  ;;  %v1689_v17 = vmul.f32 %v1681_v5, %v2504_v18  ;;  %v1684_v8 = vmul.f32 %v2138_v6, %v2122_v29  ;;  %v1726_v18 = vand.u32 127, %v1725_v16 }
 0x7f7   : > { %v2140_v9 = vpop.eup %2139  ;;  %1709 = vadd.xlane.f32.xlu1 %v1708_v7 }
 0x7f8   : > { %v1705_v10 = vsel %vm1261_vm2, %v1689_v17, 0.0  ;;  %v1692_v19 = vmul.f32 %v1684_v8, %v2522_v33  ;;  %v1683_v11 = vmul.f32 %v2140_v9, %v2124_v26  ;;  %v1729_v30 = vsub.s32 %v1726_v18, %v1728_v22 }
 0x7f9   : > { %1706 = vadd.xlane.f32.xlu0 %v1705_v10 }
 0x7fa   : > { %v1714_v12 = vsel %vm1261_vm2, %v1692_v19, 0.0  ;;  %v1691_v25 = vmul.f32 %v1683_v11, %v2512_v24 }
 0x7fb   : > { %1715 = vadd.xlane.f32.xlu1 %v1714_v12 }
 0x7fc   : > { %v1711_v14 = vsel %vm1261_vm2, %v1691_v25, 0.0 }
 0x7fd   : > { %1712 = vadd.xlane.f32.xlu0 %v1711_v14 }
 0x871   : > { %v1698_v23 = vpop.xlane.xlu1 %1697 }
 0x872   : > { %v1734_v34 = vrot.slane %v1698_v23, %v1729_v30 }
 0x873   : > { %v1695_v27 = vpop.xlane.xlu0 %1694 }
 0x874   : > { %v1730_v32 = vrot.slane %v1695_v27, %v1729_v30 }
 0x876   : > { %v1760_v24 = vsel %vm1759_vm4, %v1734_v34, %v1730_v32 }
 0x87c   : > { %v1704_v33 = vpop.xlane.xlu1 %1703 }
 0x87d   : > { %v1742_v42 = vrot.slane %v1704_v33, %v1729_v30 }
 0x87e   : > { %v1701_v20 = vpop.xlane.xlu0 %1700 }
 0x87f   : > { %v1738_v36 = vrot.slane %v1701_v20, %v1729_v30 }
 0x880   : > { %v1710_v37 = vpop.xlane.xlu1 %1709 }
 0x881   : > { %v1762_v40 = vsel %vm1761_vm5, %v1738_v36, %v1760_v24  ;;  %v1750_v29 = vrot.slane %v1710_v37, %v1729_v30 }
 0x882   : > { %v1707_v28 = vpop.xlane.xlu0 %1706  ;;  %v1764_v43 = vsel %vm1763_vm6, %v1742_v42, %v1762_v40 }
 0x883   : > { %v1746_v21 = vrot.slane %v1707_v28, %v1729_v30 }
 0x884   : > { %v1716_v46 = vpop.xlane.xlu1 %1715 }
 0x885   : > { %v1766_v45 = vsel %vm1765_vm7, %v1746_v21, %v1764_v43  ;;  %v1758_v31 = vrot.slane %v1716_v46, %v1729_v30 }
 0x886   : > { %v1713_v47 = vpop.xlane.xlu0 %1712  ;;  %v1768_v50 = vsel %vm1767_vm8, %v1750_v29, %v1766_v45 }
 0x887   : > { %v1754_v26 = vrot.slane %v1713_v47, %v1729_v30 }
 0x889   : > { %v1770_v51 = vsel %vm1769_vm9, %v1754_v26, %v1768_v50 }
 0x88a   : > { %v1772_v52 = vsel %vm1771_vm10, %v1758_v31, %v1770_v51 }
 0x88b   : > { %1774 = vst.msk [vmem:[%s433_s15] sm:$0xff] %vm1261_vm2, %v1772_v52 }
 0x88c   : > { %2154 = shalt.err (!%p2151_p3)
}
 0x88d   : > { %s2155_s30 = scalar_lea.hbm %s2631_s22, 128  ;;  %s2159_s20 = scalar_lea.hbm %s2682_s13, 256 }
 0x88e   : > { %p2156_p4 = scmp.ne.s32.totalorder %s2631_s22, %s2155_s30  ;;  %p2160_p9 = scmp.lt.s32.totalorder %s2631_s22, %s2682_s13 }
 0x88f   : > { %p2161_p10 = scmp.lt.s32.totalorder %s2159_s20, %s2155_s30 }
 0x890   : > { %p2157_p7 = pnand %p2156_p4, %p2312_p5 }
 0x891   : > { %p2162_p11 = por %p2161_p10, %p2160_p9 }
 0x892   : > { %p2158_p8 = pneg %p2157_p7 }
 0x894   : > { %p2163_p12 = pnand %p2162_p11, %p2158_p8 }
 0x896   : > { %2166 = shalt.err (!%p2163_p12)
}
 0x897   : > { %2037 = dma.vmem_to_hbm [thread:$0]  (%p2312_p5), %s1790_s16, 128, %s2631_s22, %s1776_s0  }
 0x898 PF: > { %p2043_p13 = scmp.ge.s32.totalorder %s2201_s28, 2  ;;  %s1801_s1 = sand.u32 1, %s2189_s25  }
 0x899   : > { %s1802_s2 = scalar_lea.sflag [#allocation3], %s1801_s1 }
 0x89a   : > { %p2040_p0 = pnand %p2043_p13, %p2316_p6 }
 0x89c   : > { %p2041_p1 = pneg %p2040_p0 }
 0x89e   : > { %2184 = dma.done.wait (%p2041_p1), %s1802_s2, 128  }
 0x89f   : > { %2186 = vsyncadd (%p2041_p1), %s1802_s2, 4294967168  ;;  %p23_p2 = scmp.ge.s32.totalorder %s2299_s14, 4   ;;  %s2691_s25 = smov %s2193_s26 }
 0x8a0   : > { %s2692_s26 = smov %s2197_s27  ;;  %s2693_s27 = smov %s2310_s17 }
 0x8a1   : > { %s2694_s28 = smov %s2299_s14  ;;  %25 = sbr.rel (!%p23_p2) target bundleno = 7 (0x7), region = 107 }
 0x8a6   :  { %1807 = vsyncpa [#allocation3], 1 }
 0x8a7   :  { %1809 = vsyncpa [#allocation3 + $0x1], 1 }

</bundles_post_ra>
